<compile_context>
chip_gen: v5e
topology: v5e:2x2
jax: 0.10.0
libtpu: 0.0.40
codegen_flags: <defaults>
</compile_context>

<pallas_src>
import functools
import math

import jax
import jax.numpy as jnp
from jax.experimental import pallas as pl
from jax.experimental.pallas import tpu as pltpu

LANE = 128      # lane width: last-dim padding granularity
SUBLANE = 8     # f32 sublane granularity

RESIDENT_VMEM_BUDGET = 40 * 2**20   # take the fully-resident path below this
VMEM_LIMIT_CAP = 64 * 2**20         # conservative across v5e / v6e / v7x


# --------------------------------------------------------------------------
# Small helpers
# --------------------------------------------------------------------------
def _round_up(x, m):
    return ((x + m - 1) // m) * m


def _pad2(a, rows, cols):
    pr, pc = rows - a.shape[0], cols - a.shape[1]
    if pr == 0 and pc == 0:
        return a
    return jnp.pad(a, ((0, pr), (0, pc)))


def _pick_tm():
    """Row-tile for the tiled path: 256 fills the v6e/v7x MXU, 128 on v5e."""
    try:
        kind = jax.devices()[0].device_kind.lower()
    except Exception:
        kind = ""
    return 128 if "v5" in kind else 256


def _resident_vmem_bytes(n_p, fdim_p, nh1p, nh2p):
    per_branch = (2 * n_p * n_p * 2        # interleaved adj (bf16)
                  + n_p * fdim_p * 2       # X (bf16)
                  + fdim_p * nh1p * 2 + nh1p * 4
                  + nh1p * nh2p * 2 + nh2p * 4
                  + 2 * nh2p * nh2p * 2 + nh2p * 4
                  + 3 * n_p * nh2p * 4)    # three f32 outputs
    # double-buffered over the branch axis + f32 intermediates headroom
    return 2 * per_branch + (2 * n_p) * (nh1p + nh2p) * 4 + (4 << 20)


def _tiled_vmem_bytes(n_p, tm, fdim_p, nh1p, nh2p):
    slab = 2 * tm * n_p * 2 + 3 * tm * nh2p * 4            # adj slab + out blocks
    weights = (n_p * fdim_p * 2 + fdim_p * nh1p * 2 + nh1p * 4
               + nh1p * nh2p * 2 + nh2p * 4
               + 2 * nh2p * nh2p * 2 + nh2p * 4)           # single-buffered
    scratch = n_p * nh1p * 2 + 2 * n_p * nh2p * 2
    return 2 * slab + weights + scratch + (2 * tm) * nh1p * 4 + (4 << 20)


def _vmem_limit(est):
    return int(min(max(int(est * 1.5), 32 * 2**20), VMEM_LIMIT_CAP))


# --------------------------------------------------------------------------
# Pallas kernels
# --------------------------------------------------------------------------
def _fgcn_resident_kernel(adj_ref, x_ref, w1_ref, b1_ref, w2_ref, b2_ref,
                          wf_ref, bf_ref, o_sim_ref, o_feat_ref, o_fus_ref,
                          *, n_p):
    """Fully VMEM-resident branch forward.  grid = (2 branches,), 'parallel'.

    adj_ref rows: [0:n_p] = similarity graph, [n_p:2*n_p] = feature graph, so
    layer 1 of both graphs is a single matmul against the shared X @ W1.
    """
    xw = jnp.dot(x_ref[...], w1_ref[...],
                 preferred_element_type=jnp.float32).astype(jnp.bfloat16)
    # Layer 1 (both graphs at once), fold in the layer-2 weight.
    h = jnp.dot(adj_ref[...], xw, preferred_element_type=jnp.float32)
    h = jnp.maximum(h + b1_ref[...], 0.0).astype(jnp.bfloat16)
    g = jnp.dot(h, w2_ref[...],
                preferred_element_type=jnp.float32).astype(jnp.bfloat16)
    # Layer 2 per graph.
    o_s = jnp.dot(adj_ref[pl.ds(0, n_p), :], g[:n_p],
                  preferred_element_type=jnp.float32) + b2_ref[...]
    o_f = jnp.dot(adj_ref[pl.ds(n_p, n_p), :], g[n_p:],
                  preferred_element_type=jnp.float32) + b2_ref[...]
    o_sim_ref[...] = o_s
    o_feat_ref[...] = o_f
    # Fusion Linear as ONE K = 2*nhid2 matmul (wf = [Wf_a; Wf_b] stacked at init).
    oc = jnp.concatenate([o_s, o_f], axis=-1).astype(jnp.bfloat16)
    fus = jnp.dot(oc, wf_ref[...], preferred_element_type=jnp.float32)
    o_fus_ref[...] = jnp.maximum(fus + bf_ref[...], 0.0)


def _fgcn_tiled_kernel(adj_ref, x_ref, w1_ref, b1_ref, w2_ref, b2_ref,
                       wf_ref, bf_ref, o_sim_ref, o_feat_ref, o_fus_ref,
                       xw_ref, g_s_ref, g_f_ref, *, tm):
    """Two-phase row-tiled branch forward.  grid = (2 branches, 2 phases, nt)."""
    p = pl.program_id(1)   # phase
    i = pl.program_id(2)   # adj row slab

    @pl.when((p == 0) & (i == 0))
    def _():
        # Per-branch prologue: X @ W1 is shared by both graphs of the branch.
        xw_ref[...] = jnp.dot(x_ref[...], w1_ref[...],
                              preferred_element_type=jnp.float32
                              ).astype(jnp.bfloat16)
        # Outputs are parked on row-block 0 through phase 0; zero-init them so
        # any early writeback is benign (review correctness concern).
        o_sim_ref[...] = jnp.zeros_like(o_sim_ref)
        o_feat_ref[...] = jnp.zeros_like(o_feat_ref)
        o_fus_ref[...] = jnp.zeros_like(o_fus_ref)

    @pl.when(p == 0)
    def _():
        # Layer 1 for a [sim slab; feat slab] pair, fold in the layer-2 weight:
        #   g = relu(adj_rows @ (X W1) + b1) @ W2     -> persistent VMEM scratch
        r = pl.multiple_of(i * tm, tm)
        h = jnp.dot(adj_ref[...], xw_ref[...], preferred_element_type=jnp.float32)
        h = jnp.maximum(h + b1_ref[...], 0.0).astype(jnp.bfloat16)
        g = jnp.dot(h, w2_ref[...],
                    preferred_element_type=jnp.float32).astype(jnp.bfloat16)
        g_s_ref[pl.ds(r, tm), :] = g[:tm]
        g_f_ref[pl.ds(r, tm), :] = g[tm:]

    @pl.when(p == 1)
    def _():
        # Layer 2 row slab + fusion Linear as a single K = 2*nhid2 matmul.
        o_s = jnp.dot(adj_ref[pl.ds(0, tm), :], g_s_ref[...],
                      preferred_element_type=jnp.float32) + b2_ref[...]
        o_f = jnp.dot(adj_ref[pl.ds(tm, tm), :], g_f_ref[...],
                      preferred_element_type=jnp.float32) + b2_ref[...]
        o_sim_ref[...] = o_s
        o_feat_ref[...] = o_f
        oc = jnp.concatenate([o_s, o_f], axis=-1).astype(jnp.bfloat16)
        fus = jnp.dot(oc, wf_ref[...], preferred_element_type=jnp.float32)
        o_fus_ref[...] = jnp.maximum(fus + bf_ref[...], 0.0)


# --------------------------------------------------------------------------
# pallas_call wrappers (both branches batched along a 'parallel' grid axis)
# --------------------------------------------------------------------------
def _fgcn_resident_call(adj, x, pk, meta):
    n_p, fdim_p = meta["n_p"], meta["fdim_p"]
    nh1p, nh2p = meta["nhid1_p"], meta["nhid2_p"]

    full = lambda b: (b, 0, 0)
    out_struct = jax.ShapeDtypeStruct((2, n_p, nh2p), jnp.float32)
    est = _resident_vmem_bytes(n_p, fdim_p, nh1p, nh2p)
    return pl.pallas_call(
        functools.partial(_fgcn_resident_kernel, n_p=n_p),
        out_shape=[out_struct, out_struct, out_struct],
        grid_spec=pltpu.PrefetchScalarGridSpec(
            num_scalar_prefetch=0,
            grid=(2,),
            in_specs=[
                pl.BlockSpec((None, 2 * n_p, n_p), full),       # adj [sim; feat]
                pl.BlockSpec((None, n_p, fdim_p), full),        # X         (bf16)
                pl.BlockSpec((None, fdim_p, nh1p), full),       # W1        (bf16)
                pl.BlockSpec((None, 1, nh1p), full),            # b1        (f32)
                pl.BlockSpec((None, nh1p, nh2p), full),         # W2        (bf16)
                pl.BlockSpec((None, 1, nh2p), full),            # b2        (f32)
                pl.BlockSpec((None, 2 * nh2p, nh2p), full),     # [Wf_a;Wf_b]
                pl.BlockSpec((None, 1, nh2p), full),            # fusion bias
            ],
            out_specs=[pl.BlockSpec((None, n_p, nh2p), full) for _ in range(3)],
        ),
        compiler_params=pltpu.CompilerParams(
            dimension_semantics=("parallel",),           # one branch per TC on v7x
            vmem_limit_bytes=_vmem_limit(est)),
    )(adj, x, pk["w1"], pk["b1"], pk["w2"], pk["b2"], pk["wf"], pk["bf"])


def _fgcn_tiled_call(adj, x, pk, meta):
    n_p, tm, nt = meta["n_p"], meta["tm"], meta["nt"]
    fdim_p, nh1p, nh2p = meta["fdim_p"], meta["nhid1_p"], meta["nhid2_p"]

    slab = lambda b, p, i: (b, i, 0)       # adj [sim; feat] row slabs
    full = lambda b, p, i: (b, 0, 0)       # per-branch resident operands
    # Outputs stay parked on row-block 0 during phase 0 (zero-initialised in
    # the kernel) and are filled per-slab in phase 1.
    outm = lambda b, p, i: (b, i * p, 0)
    # Branch-invariant-per-sweep operands: single-buffer to halve their VMEM.
    inv = dict(pipeline_mode=pl.Buffered(1))

    out_struct = jax.ShapeDtypeStruct((2, n_p, nh2p), jnp.float32)
    est = _tiled_vmem_bytes(n_p, tm, fdim_p, nh1p, nh2p)
    return pl.pallas_call(
        functools.partial(_fgcn_tiled_kernel, tm=tm),
        out_shape=[out_struct, out_struct, out_struct],
        grid_spec=pltpu.PrefetchScalarGridSpec(
            num_scalar_prefetch=0,
            grid=(2, 2, nt),
            in_specs=[
                pl.BlockSpec((None, 2 * tm, n_p), slab),            # adj slab
                pl.BlockSpec((None, n_p, fdim_p), full, **inv),     # X
                pl.BlockSpec((None, fdim_p, nh1p), full, **inv),    # W1
                pl.BlockSpec((None, 1, nh1p), full, **inv),         # b1
                pl.BlockSpec((None, nh1p, nh2p), full, **inv),      # W2
                pl.BlockSpec((None, 1, nh2p), full, **inv),         # b2
                pl.BlockSpec((None, 2 * nh2p, nh2p), full, **inv),  # [Wf_a;Wf_b]
                pl.BlockSpec((None, 1, nh2p), full, **inv),         # fusion bias
            ],
            out_specs=[pl.BlockSpec((None, tm, nh2p), outm) for _ in range(3)],
            scratch_shapes=[
                pltpu.VMEM((n_p, nh1p), jnp.bfloat16),   # X @ W1
                pltpu.VMEM((n_p, nh2p), jnp.bfloat16),   # g (sim graph)
                pltpu.VMEM((n_p, nh2p), jnp.bfloat16),   # g (feature graph)
            ],
        ),
        compiler_params=pltpu.CompilerParams(
            dimension_semantics=("parallel", "arbitrary", "arbitrary"),
            vmem_limit_bytes=_vmem_limit(est)),
    )(adj, x, pk["w1"], pk["b1"], pk["w2"], pk["b2"], pk["wf"], pk["bf"])


# --------------------------------------------------------------------------
# Parameter init + one-time packing (PyTorch-equivalent raw weights kept too)
# --------------------------------------------------------------------------
def init_graph_conv(key, in_features, out_features):
    stdv = 1.0 / math.sqrt(out_features)
    kw, kb = jax.random.split(key)
    w = jax.random.uniform(kw, (in_features, out_features),
                           minval=-stdv, maxval=stdv, dtype=jnp.float32)
    b = jax.random.uniform(kb, (out_features,),
                           minval=-stdv, maxval=stdv, dtype=jnp.float32)
    return {"w": w, "b": b}


def init_gcn(key, features, nhid1, nhid2):
    k1, k2 = jax.random.split(key)
    return {"gc1": init_graph_conv(k1, features, nhid1),
            "gc2": init_graph_conv(k2, nhid1, nhid2)}


def init_fusion_linear(key, nhid2):
    in_f, out_f = 2 * nhid2, nhid2
    bound = 1.0 / math.sqrt(in_f)
    kw, kb = jax.random.split(key)
    w = jax.random.uniform(kw, (out_f, in_f),
                           minval=-bound, maxval=bound, dtype=jnp.float32)
    b = jax.random.uniform(kb, (out_f,),
                           minval=-bound, maxval=bound, dtype=jnp.float32)
    return {"w": w, "b": b}


def _pack_params(raw, dims):
    """Pad / transpose / stack all weights ONCE into kernel-ready bf16 form."""
    fdim_p, nh1p, nh2p = dims["fdim_p"], dims["nhid1_p"], dims["nhid2_p"]
    nhid2 = dims["nhid2"]

    def gcn_branch(gcn):
        gc1, gc2 = gcn["gc1"], gcn["gc2"]
        w1 = _pad2(gc1["w"], fdim_p, nh1p).astype(jnp.bfloat16)
        b1 = _pad2(gc1["b"].reshape(1, -1), 1, nh1p)
        w2 = _pad2(gc2["w"], nh1p, nh2p).astype(jnp.bfloat16)
        b2 = _pad2(gc2["b"].reshape(1, -1), 1, nh2p)
        return w1, b1, w2, b2

    def fusion_branch(fu):
        # nn.Linear: concat([o_sim, o_feat], 1) @ W^T + b.  Split W^T and stack
        # the two halves along K at init so the fused epilogue is ONE matmul.
        w, b = fu["w"], fu["b"]
        wa = _pad2(w[:, :nhid2].T, nh2p, nh2p)
        wb = _pad2(w[:, nhid2:].T, nh2p, nh2p)
        wf = jnp.concatenate([wa, wb], axis=0).astype(jnp.bfloat16)
        bf = _pad2(b.reshape(1, -1), 1, nh2p)
        return wf, bf

    w1d, b1d, w2d, b2d = gcn_branch(raw["FGCN_drug"])
    w1e, b1e, w2e, b2e = gcn_branch(raw["FGCN_disease"])
    wfd, bfd = fusion_branch(raw["drug_fusion"])
    wfe, bfe = fusion_branch(raw["disease_fusion"])
    return {
        "w1": jnp.stack([w1d, w1e]), "b1": jnp.stack([b1d, b1e]),
        "w2": jnp.stack([w2d, w2e]), "b2": jnp.stack([b2d, b2e]),
        "wf": jnp.stack([wfd, wfe]), "bf": jnp.stack([bfd, bfe]),
    }


def init_fgcn(key, fdim_drug, fdim_disease, nhid1, nhid2):
    k1, k2, k3, k4 = jax.random.split(key, 4)
    raw = {
        "FGCN_drug": init_gcn(k1, fdim_drug, nhid1, nhid2),
        "FGCN_disease": init_gcn(k2, fdim_disease, nhid1, nhid2),
        "drug_fusion": init_fusion_linear(k3, nhid2),
        "disease_fusion": init_fusion_linear(k4, nhid2),
    }
    dims = {
        "fdim_drug": fdim_drug, "fdim_disease": fdim_disease,
        "nhid1": nhid1, "nhid2": nhid2,
        "fdim_p": _round_up(max(fdim_drug, fdim_disease), LANE),
        "nhid1_p": _round_up(nhid1, LANE),
        "nhid2_p": _round_up(nhid2, LANE),
    }
    return {"raw": raw, "dims": dims, "packed": _pack_params(raw, dims)}


# --------------------------------------------------------------------------
# One-time input preparation (review item 1: pad/cast OUTSIDE the forward)
# --------------------------------------------------------------------------
def prepare_fgcn_inputs(params, drug_graph, drug_sim_feat,
                        dis_graph, disease_sim_feat,
                        drug_feature_graph, disease_feature_graph):
    dims = params["dims"]
    fdim_p, nh1p, nh2p = dims["fdim_p"], dims["nhid1_p"], dims["nhid2_p"]
    n_drug, n_dis = drug_sim_feat.shape[0], disease_sim_feat.shape[0]
    n_max = max(n_drug, n_dis)

    # Choose fully-resident vs two-phase tiled path (items 2, 4, 10).
    n_p_res = _round_up(n_max, LANE) if n_max >= LANE else _round_up(n_max, SUBLANE)
    if _resident_vmem_bytes(n_p_res, fdim_p, nh1p, nh2p) <= RESIDENT_VMEM_BUDGET:
        resident, n_p, tm, nt = True, n_p_res, n_p_res, 1
    else:
        resident = False
        tm = _pick_tm()
        n_p = _round_up(n_max, tm)
        nt = n_p // tm

    def branch(adj_s, adj_f, feat):
        a_s = _pad2(adj_s, n_p, n_p).astype(jnp.bfloat16)
        a_f = _pad2(adj_f, n_p, n_p).astype(jnp.bfloat16)
        # Interleave per row slab so a single (2*tm, n_p) block carries the
        # matching sim & feature slabs (one fused layer-1 matmul, item 5).
        a = jnp.concatenate([a_s.reshape(nt, tm, n_p),
                             a_f.reshape(nt, tm, n_p)],
                            axis=1).reshape(2 * n_p, n_p)
        xx = _pad2(feat, n_p, fdim_p).astype(jnp.bfloat16)
        return a, xx

    a0, x0 = branch(drug_graph, drug_feature_graph, drug_sim_feat)
    a1, x1 = branch(dis_graph, disease_feature_graph, disease_sim_feat)
    graphs = {"adj": jnp.stack([a0, a1]), "x": jnp.stack([x0, x1])}
    meta = dict(n_p=n_p, tm=tm, nt=nt, resident=resident,
                n_drug=n_drug, n_dis=n_dis, nhid2=dims["nhid2"],
                fdim_p=fdim_p, nhid1_p=nh1p, nhid2_p=nh2p)
    return graphs, meta


# --------------------------------------------------------------------------
# Forward passes
# --------------------------------------------------------------------------
def fgcn_apply(packed, adj, x, meta):
    """Run both FGCN branches from prepared (pre-padded, bf16) inputs."""
    if meta["resident"]:
        o_sim, o_feat, o_fus = _fgcn_resident_call(adj, x, packed, meta)
    else:
        o_sim, o_feat, o_fus = _fgcn_tiled_call(adj, x, packed, meta)
    nd, ne, h = meta["n_drug"], meta["n_dis"], meta["nhid2"]
    emb1_sim, emb1_feat, emb1 = o_sim[0, :nd, :h], o_feat[0, :nd, :h], o_fus[0, :nd, :h]
    emb2_sim, emb2_feat, emb2 = o_sim[1, :ne, :h], o_feat[1, :ne, :h], o_fus[1, :ne, :h]
    # F.dropout(..., training=False) -> identity
    return emb1, emb2, emb1_sim, emb1_feat, emb2_sim, emb2_feat


def fgcn_forward(params, drug_graph, drug_sim_feat, dis_graph, disease_sim_feat,
                 drug_feature_graph=None, disease_feature_graph=None):
    """torch-parity convenience wrapper (callers should hoist prepare_*)."""
    has_feat = (drug_feature_graph is not None
                and disease_feature_graph is not None)
    if not has_feat:
        # GCN-only path: reuse the fused branch kernel with feat-graph := sim.
        # TODO(synk): this recomputes the (unused) feature-graph GCN + fusion.
        drug_feature_graph, disease_feature_graph = drug_graph, dis_graph
    graphs, meta = prepare_fgcn_inputs(
        params, drug_graph, drug_sim_feat, dis_graph, disease_sim_feat,
        drug_feature_graph, disease_feature_graph)
    outs = fgcn_apply(params["packed"], graphs["adj"], graphs["x"], meta)
    if not has_feat:
        e1s, e2s = outs[2], outs[4]
        return e1s, e2s, e1s, None, e2s, None
    return outs


# --------------------------------------------------------------------------
# Pure-JAX f32 reference (loose bf16-tolerant sanity check)
# --------------------------------------------------------------------------
def _ref_gcn(gcn, x, adj):
    h = jnp.maximum(adj @ (x @ gcn["gc1"]["w"]) + gcn["gc1"]["b"], 0.0)
    return adj @ (h @ gcn["gc2"]["w"]) + gcn["gc2"]["b"]


def _ref_fusion(fu, a, b):
    return jnp.maximum(jnp.concatenate([a, b], axis=1) @ fu["w"].T + fu["b"], 0.0)


# --------------------------------------------------------------------------
# Main
# --------------------------------------------------------------------------
if __name__ == "__main__":
    n_drug, n_dis = 16, 12
    fdim_drug, fdim_disease = 32, 24
    nhid1, nhid2 = 32, 16

    key = jax.random.PRNGKey(0)
    kp, k1, k2, k3, k4, k5, k6 = jax.random.split(key, 7)
    params = init_fgcn(kp, fdim_drug, fdim_disease, nhid1, nhid2)

    drug_graph = jax.random.uniform(k1, (n_drug, n_drug), dtype=jnp.float32)
    drug_sim_feat = jax.random.normal(k2, (n_drug, fdim_drug), dtype=jnp.float32)
    dis_graph = jax.random.uniform(k3, (n_dis, n_dis), dtype=jnp.float32)
    disease_sim_feat = jax.random.normal(k4, (n_dis, fdim_disease), dtype=jnp.float32)
    drug_feature_graph = jax.random.uniform(k5, (n_drug, n_drug), dtype=jnp.float32)
    disease_feature_graph = jax.random.uniform(k6, (n_dis, n_dis), dtype=jnp.float32)

    # Item 1: adjacency/feature pad + bf16 cast happens ONCE, outside the jit.
    graphs, meta = prepare_fgcn_inputs(
        params, drug_graph, drug_sim_feat, dis_graph, disease_sim_feat,
        drug_feature_graph, disease_feature_graph)

    fwd = jax.jit(lambda pk, adj, x: fgcn_apply(pk, adj, x, meta))
    outs = jax.block_until_ready(fwd(params["packed"], graphs["adj"], graphs["x"]))

    emb1, emb2, emb1_sim, emb1_feat, emb2_sim, emb2_feat = outs
    assert emb1.shape == (n_drug, nhid2)
    assert emb2.shape == (n_dis, nhid2)
    assert emb1_sim.shape == (n_drug, nhid2)
    assert emb1_feat.shape == (n_drug, nhid2)
    assert emb2_sim.shape == (n_dis, nhid2)
    assert emb2_feat.shape == (n_dis, nhid2)

    # Loose numerical check vs. the f32 reference (bf16 MXU operands).
    raw = params["raw"]
    e1s = _ref_gcn(raw["FGCN_drug"], drug_sim_feat, drug_graph)
    e1f = _ref_gcn(raw["FGCN_drug"], drug_sim_feat, drug_feature_graph)
    e2s = _ref_gcn(raw["FGCN_disease"], disease_sim_feat, dis_graph)
    e2f = _ref_gcn(raw["FGCN_disease"], disease_sim_feat, disease_feature_graph)
    e1 = _ref_fusion(raw["drug_fusion"], e1s, e1f)
    e2 = _ref_fusion(raw["disease_fusion"], e2s, e2f)
    for got, ref in zip(outs, (e1, e2, e1s, e1f, e2s, e2f)):
        rel = float(jnp.linalg.norm(got - ref) / (jnp.linalg.norm(ref) + 1e-6))
        assert rel < 8e-2, f"relative error too large: {rel}"

    print("KERNEL_OK")
</pallas_src>

<mosaic_0001>
module attributes {stable_mosaic.version = 11 : i64} {
  func.func @_fgcn_resident_kernel(%arg0: i32, %arg1: memref<1x32x16xbf16, #tpu.memory_space<vmem>>, %arg2: memref<1x16x128xbf16, #tpu.memory_space<vmem>>, %arg3: memref<1x128x128xbf16, #tpu.memory_space<vmem>>, %arg4: memref<1x1x128xf32, #tpu.memory_space<vmem>>, %arg5: memref<1x128x128xbf16, #tpu.memory_space<vmem>>, %arg6: memref<1x1x128xf32, #tpu.memory_space<vmem>>, %arg7: memref<1x256x128xbf16, #tpu.memory_space<vmem>>, %arg8: memref<1x1x128xf32, #tpu.memory_space<vmem>>, %arg9: memref<1x16x128xf32, #tpu.memory_space<vmem>>, %arg10: memref<1x16x128xf32, #tpu.memory_space<vmem>>, %arg11: memref<1x16x128xf32, #tpu.memory_space<vmem>>) attributes {dimension_semantics = [#tpu.dimension_semantics<parallel>], iteration_bounds = array<i64: 2>, scalar_prefetch = 0 : i64, scratch_operands = 0 : i64, tpu.core_type = #tpu.core_type<tc>, window_params = [{transform_indices = @transform_0, window_bounds = array<i64: 1, 32, 16>}, {transform_indices = @transform_1, window_bounds = array<i64: 1, 16, 128>}, {transform_indices = @transform_2, window_bounds = array<i64: 1, 128, 128>}, {transform_indices = @transform_3, window_bounds = array<i64: 1, 1, 128>}, {transform_indices = @transform_4, window_bounds = array<i64: 1, 128, 128>}, {transform_indices = @transform_5, window_bounds = array<i64: 1, 1, 128>}, {transform_indices = @transform_6, window_bounds = array<i64: 1, 256, 128>}, {transform_indices = @transform_7, window_bounds = array<i64: 1, 1, 128>}, {transform_indices = @transform_8, window_bounds = array<i64: 1, 16, 128>}, {transform_indices = @transform_9, window_bounds = array<i64: 1, 16, 128>}, {transform_indices = @transform_10, window_bounds = array<i64: 1, 16, 128>}]} {
    %c0 = arith.constant 0 : index
    %c0_0 = arith.constant 0 : index
    %c0_1 = arith.constant 0 : index
    %0 = vector.load %arg2[%c0, %c0_0, %c0_1] : memref<1x16x128xbf16, #tpu.memory_space<vmem>>, vector<1x16x128xbf16>
    %1 = vector.shape_cast %0 : vector<1x16x128xbf16> to vector<16x128xbf16>
    %c0_2 = arith.constant 0 : index
    %c0_3 = arith.constant 0 : index
    %c0_4 = arith.constant 0 : index
    %2 = vector.load %arg3[%c0_2, %c0_3, %c0_4] : memref<1x128x128xbf16, #tpu.memory_space<vmem>>, vector<1x128x128xbf16>
    %3 = vector.shape_cast %2 : vector<1x128x128xbf16> to vector<128x128xbf16>
    %cst = arith.constant dense<0.000000e+00> : vector<16x128xf32>
    %4 = tpu.matmul %1, %3, %cst {dimension_numbers = #tpu.dot_dimension_numbers<[1], [0], [0], [1], [0, 0, 1, 1], [], []>} : vector<16x128xbf16>, vector<128x128xbf16>, vector<16x128xf32> -> vector<16x128xf32>
    %5 = arith.truncf %4 : vector<16x128xf32> to vector<16x128xbf16>
    %c0_5 = arith.constant 0 : index
    %c0_6 = arith.constant 0 : index
    %c0_7 = arith.constant 0 : index
    %6 = vector.load %arg1[%c0_5, %c0_6, %c0_7] : memref<1x32x16xbf16, #tpu.memory_space<vmem>>, vector<1x32x16xbf16>
    %7 = vector.shape_cast %6 : vector<1x32x16xbf16> to vector<32x16xbf16>
    %cst_8 = arith.constant dense<0.000000e+00> : vector<32x128xf32>
    %8 = tpu.matmul %7, %5, %cst_8 {dimension_numbers = #tpu.dot_dimension_numbers<[1], [0], [0], [1], [0, 0, 1, 1], [], []>} : vector<32x16xbf16>, vector<16x128xbf16>, vector<32x128xf32> -> vector<32x128xf32>
    %c0_9 = arith.constant 0 : index
    %c0_10 = arith.constant 0 : index
    %c0_11 = arith.constant 0 : index
    %9 = vector.load %arg4[%c0_9, %c0_10, %c0_11] : memref<1x1x128xf32, #tpu.memory_space<vmem>>, vector<1x1x128xf32>
    %10 = vector.shape_cast %9 : vector<1x1x128xf32> to vector<1x128xf32>
    %11 = vector.broadcast %10 : vector<1x128xf32> to vector<32x128xf32>
    %12 = arith.addf %8, %11 : vector<32x128xf32>
    %cst_12 = arith.constant 0.000000e+00 : f32
    %13 = vector.broadcast %cst_12 : f32 to vector<32x128xf32>
    %14 = arith.maximumf %12, %13 : vector<32x128xf32>
    %15 = arith.truncf %14 : vector<32x128xf32> to vector<32x128xbf16>
    %c0_13 = arith.constant 0 : index
    %c0_14 = arith.constant 0 : index
    %c0_15 = arith.constant 0 : index
    %16 = vector.load %arg5[%c0_13, %c0_14, %c0_15] : memref<1x128x128xbf16, #tpu.memory_space<vmem>>, vector<1x128x128xbf16>
    %17 = vector.shape_cast %16 : vector<1x128x128xbf16> to vector<128x128xbf16>
    %cst_16 = arith.constant dense<0.000000e+00> : vector<32x128xf32>
    %18 = tpu.matmul %15, %17, %cst_16 {dimension_numbers = #tpu.dot_dimension_numbers<[1], [0], [0], [1], [0, 0, 1, 1], [], []>} : vector<32x128xbf16>, vector<128x128xbf16>, vector<32x128xf32> -> vector<32x128xf32>
    %19 = arith.truncf %18 : vector<32x128xf32> to vector<32x128xbf16>
    %c0_17 = arith.constant 0 : index
    %c0_18 = arith.constant 0 : index
    %c0_19 = arith.constant 0 : index
    %20 = vector.load %arg1[%c0_17, %c0_18, %c0_19] : memref<1x32x16xbf16, #tpu.memory_space<vmem>>, vector<1x16x16xbf16>
    %21 = vector.shape_cast %20 : vector<1x16x16xbf16> to vector<16x16xbf16>
    %22 = vector.extract_strided_slice %19 {offsets = [0, 0], sizes = [16, 128], strides = [1, 1]} : vector<32x128xbf16> to vector<16x128xbf16>
    %cst_20 = arith.constant dense<0.000000e+00> : vector<16x128xf32>
    %23 = tpu.matmul %21, %22, %cst_20 {dimension_numbers = #tpu.dot_dimension_numbers<[1], [0], [0], [1], [0, 0, 1, 1], [], []>} : vector<16x16xbf16>, vector<16x128xbf16>, vector<16x128xf32> -> vector<16x128xf32>
    %c0_21 = arith.constant 0 : index
    %c0_22 = arith.constant 0 : index
    %c0_23 = arith.constant 0 : index
    %24 = vector.load %arg6[%c0_21, %c0_22, %c0_23] : memref<1x1x128xf32, #tpu.memory_space<vmem>>, vector<1x1x128xf32>
    %25 = vector.shape_cast %24 : vector<1x1x128xf32> to vector<1x128xf32>
    %26 = vector.broadcast %25 : vector<1x128xf32> to vector<16x128xf32>
    %27 = arith.addf %23, %26 : vector<16x128xf32>
    %c0_24 = arith.constant 0 : index
    %c16 = arith.constant 16 : index
    %c0_25 = arith.constant 0 : index
    %28 = vector.load %arg1[%c0_24, %c16, %c0_25] : memref<1x32x16xbf16, #tpu.memory_space<vmem>>, vector<1x16x16xbf16>
    %29 = vector.shape_cast %28 : vector<1x16x16xbf16> to vector<16x16xbf16>
    %30 = vector.extract_strided_slice %19 {offsets = [16, 0], sizes = [16, 128], strides = [1, 1]} : vector<32x128xbf16> to vector<16x128xbf16>
    %cst_26 = arith.constant dense<0.000000e+00> : vector<16x128xf32>
    %31 = tpu.matmul %29, %30, %cst_26 {dimension_numbers = #tpu.dot_dimension_numbers<[1], [0], [0], [1], [0, 0, 1, 1], [], []>} : vector<16x16xbf16>, vector<16x128xbf16>, vector<16x128xf32> -> vector<16x128xf32>
    %c0_27 = arith.constant 0 : index
    %c0_28 = arith.constant 0 : index
    %c0_29 = arith.constant 0 : index
    %32 = vector.load %arg6[%c0_27, %c0_28, %c0_29] : memref<1x1x128xf32, #tpu.memory_space<vmem>>, vector<1x1x128xf32>
    %33 = vector.shape_cast %32 : vector<1x1x128xf32> to vector<1x128xf32>
    %34 = vector.broadcast %33 : vector<1x128xf32> to vector<16x128xf32>
    %35 = arith.addf %31, %34 : vector<16x128xf32>
    %c0_30 = arith.constant 0 : index
    %c0_31 = arith.constant 0 : index
    %c0_32 = arith.constant 0 : index
    %36 = vector.load %arg9[%c0_30, %c0_31, %c0_32] : memref<1x16x128xf32, #tpu.memory_space<vmem>>, vector<1x16x128xf32>
    %37 = vector.shape_cast %36 : vector<1x16x128xf32> to vector<16x128xf32>
    %38 = vector.shape_cast %27 : vector<16x128xf32> to vector<1x16x128xf32>
    tpu.vector_store %arg9[%c0_30, %c0_31, %c0_32], %38 {strides = array<i32>} : memref<1x16x128xf32, #tpu.memory_space<vmem>>, vector<1x16x128xf32>,
    %c0_33 = arith.constant 0 : index
    %c0_34 = arith.constant 0 : index
    %c0_35 = arith.constant 0 : index
    %39 = vector.load %arg10[%c0_33, %c0_34, %c0_35] : memref<1x16x128xf32, #tpu.memory_space<vmem>>, vector<1x16x128xf32>
    %40 = vector.shape_cast %39 : vector<1x16x128xf32> to vector<16x128xf32>
    %41 = vector.shape_cast %35 : vector<16x128xf32> to vector<1x16x128xf32>
    tpu.vector_store %arg10[%c0_33, %c0_34, %c0_35], %41 {strides = array<i32>} : memref<1x16x128xf32, #tpu.memory_space<vmem>>, vector<1x16x128xf32>,
    %42 = tpu.concatenate %27, %35 in 1 : vector<16x128xf32>, vector<16x128xf32> -> vector<16x256xf32>
    %43 = arith.truncf %42 : vector<16x256xf32> to vector<16x256xbf16>
    %c0_36 = arith.constant 0 : index
    %c0_37 = arith.constant 0 : index
    %c0_38 = arith.constant 0 : index
    %44 = vector.load %arg7[%c0_36, %c0_37, %c0_38] : memref<1x256x128xbf16, #tpu.memory_space<vmem>>, vector<1x256x128xbf16>
    %45 = vector.shape_cast %44 : vector<1x256x128xbf16> to vector<256x128xbf16>
    %cst_39 = arith.constant dense<0.000000e+00> : vector<16x128xf32>
    %46 = tpu.matmul %43, %45, %cst_39 {dimension_numbers = #tpu.dot_dimension_numbers<[1], [0], [0], [1], [0, 0, 1, 1], [], []>} : vector<16x256xbf16>, vector<256x128xbf16>, vector<16x128xf32> -> vector<16x128xf32>
    %c0_40 = arith.constant 0 : index
    %c0_41 = arith.constant 0 : index
    %c0_42 = arith.constant 0 : index
    %47 = vector.load %arg8[%c0_40, %c0_41, %c0_42] : memref<1x1x128xf32, #tpu.memory_space<vmem>>, vector<1x1x128xf32>
    %48 = vector.shape_cast %47 : vector<1x1x128xf32> to vector<1x128xf32>
    %49 = vector.broadcast %48 : vector<1x128xf32> to vector<16x128xf32>
    %50 = arith.addf %46, %49 : vector<16x128xf32>
    %cst_43 = arith.constant 0.000000e+00 : f32
    %51 = vector.broadcast %cst_43 : f32 to vector<16x128xf32>
    %52 = arith.maximumf %50, %51 : vector<16x128xf32>
    %c0_44 = arith.constant 0 : index
    %c0_45 = arith.constant 0 : index
    %c0_46 = arith.constant 0 : index
    %53 = vector.load %arg11[%c0_44, %c0_45, %c0_46] : memref<1x16x128xf32, #tpu.memory_space<vmem>>, vector<1x16x128xf32>
    %54 = vector.shape_cast %53 : vector<1x16x128xf32> to vector<16x128xf32>
    %55 = vector.shape_cast %52 : vector<16x128xf32> to vector<1x16x128xf32>
    tpu.vector_store %arg11[%c0_44, %c0_45, %c0_46], %55 {strides = array<i32>} : memref<1x16x128xf32, #tpu.memory_space<vmem>>, vector<1x16x128xf32>,
    return
  }
  func.func @transform_0(%arg0: i32) -> (i32, i32, i32) {
    %c0_i32 = arith.constant 0 : i32
    %c0_i32_0 = arith.constant 0 : i32
    %c0_i32_1 = arith.constant 0 : i32
    return %arg0, %c0_i32, %c0_i32_0 : i32, i32, i32
  }
  func.func @transform_1(%arg0: i32) -> (i32, i32, i32) {
    %c0_i32 = arith.constant 0 : i32
    %c0_i32_0 = arith.constant 0 : i32
    %c0_i32_1 = arith.constant 0 : i32
    return %arg0, %c0_i32, %c0_i32_0 : i32, i32, i32
  }
  func.func @transform_2(%arg0: i32) -> (i32, i32, i32) {
    %c0_i32 = arith.constant 0 : i32
    %c0_i32_0 = arith.constant 0 : i32
    %c0_i32_1 = arith.constant 0 : i32
    return %arg0, %c0_i32, %c0_i32_0 : i32, i32, i32
  }
  func.func @transform_3(%arg0: i32) -> (i32, i32, i32) {
    %c0_i32 = arith.constant 0 : i32
    %c0_i32_0 = arith.constant 0 : i32
    %c0_i32_1 = arith.constant 0 : i32
    return %arg0, %c0_i32, %c0_i32_0 : i32, i32, i32
  }
  func.func @transform_4(%arg0: i32) -> (i32, i32, i32) {
    %c0_i32 = arith.constant 0 : i32
    %c0_i32_0 = arith.constant 0 : i32
    %c0_i32_1 = arith.constant 0 : i32
    return %arg0, %c0_i32, %c0_i32_0 : i32, i32, i32
  }
  func.func @transform_5(%arg0: i32) -> (i32, i32, i32) {
    %c0_i32 = arith.constant 0 : i32
    %c0_i32_0 = arith.constant 0 : i32
    %c0_i32_1 = arith.constant 0 : i32
    return %arg0, %c0_i32, %c0_i32_0 : i32, i32, i32
  }
  func.func @transform_6(%arg0: i32) -> (i32, i32, i32) {
    %c0_i32 = arith.constant 0 : i32
    %c0_i32_0 = arith.constant 0 : i32
    %c0_i32_1 = arith.constant 0 : i32
    return %arg0, %c0_i32, %c0_i32_0 : i32, i32, i32
  }
  func.func @transform_7(%arg0: i32) -> (i32, i32, i32) {
    %c0_i32 = arith.constant 0 : i32
    %c0_i32_0 = arith.constant 0 : i32
    %c0_i32_1 = arith.constant 0 : i32
    return %arg0, %c0_i32, %c0_i32_0 : i32, i32, i32
  }
  func.func @transform_8(%arg0: i32) -> (i32, i32, i32) {
    %c0_i32 = arith.constant 0 : i32
    %c0_i32_0 = arith.constant 0 : i32
    %c0_i32_1 = arith.constant 0 : i32
    return %arg0, %c0_i32, %c0_i32_0 : i32, i32, i32
  }
  func.func @transform_9(%arg0: i32) -> (i32, i32, i32) {
    %c0_i32 = arith.constant 0 : i32
    %c0_i32_0 = arith.constant 0 : i32
    %c0_i32_1 = arith.constant 0 : i32
    return %arg0, %c0_i32, %c0_i32_0 : i32, i32, i32
  }
  func.func @transform_10(%arg0: i32) -> (i32, i32, i32) {
    %c0_i32 = arith.constant 0 : i32
    %c0_i32_0 = arith.constant 0 : i32
    %c0_i32_1 = arith.constant 0 : i32
    return %arg0, %c0_i32, %c0_i32_0 : i32, i32, i32
  }
}

</mosaic_0001>

<bundles_post_ra>
// kernel: _lambda_.1
= control target key start
LH: loop header
LB: loop body
LE: loop exit
PB: predicated region body
PF: predicated region fallthrough
CT: control target
= control target key end

     0   :  { %s1947_s0 = inlined_call_operand.vmem [shape: bf16[2,32,16], index: 0, kind: input, shape index: {}]   ;;  %s1948_s1 = inlined_call_operand.vmem [shape: bf16[2,16,128], index: 1, kind: input, shape index: {}]   ;;  %s1949_s2 = inlined_call_operand.hbm [shape: bf16[2,128,128], index: 2, kind: input, shape index: {}]   ;;  %s1950_s3 = inlined_call_operand.vmem [shape: f32[2,1,128], index: 3, kind: input, shape index: {}]   ;;  %s1951_s4 = inlined_call_operand.hbm [shape: bf16[2,128,128], index: 4, kind: input, shape index: {}]   ;;  %s1952_s5 = inlined_call_operand.vmem [shape: f32[2,1,128], index: 5, kind: input, shape index: {}]   ;;  %s1953_s6 = inlined_call_operand.hbm [shape: bf16[2,256,128], index: 6, kind: input, shape index: {}]   ;;  %s1954_s7 = inlined_call_operand.vmem [shape: f32[2,1,128], index: 7, kind: input, shape index: {}]   ;;  %s1955_s8 = inlined_call_operand.vmem [shape: f32[2,16,128], index: 8, kind: output, shape index: {0}]   ;;  %s1956_s9 = inlined_call_operand.vmem [shape: f32[2,16,128], index: 9, kind: output, shape index: {1}]   ;;  %s1957_s10 = inlined_call_operand.vmem [shape: f32[2,16,128], index: 10, kind: output, shape index: {2}]  }
   0x1   :  { %1965 = sst [smem:[#allocation12_spill]] %s1949_s2 }
   0x2   :  { %1966 = sst [smem:[#allocation13_spill]] %s1951_s4 }
   0x3   :  { %1967 = sst [smem:[#allocation14_spill]] %s1957_s10 }
   0x4   :  { %16 = vsyncpa [#allocation3], 0 }
   0x5   :  { %18 = vsyncpa [#allocation3 + $0x1], 0 }
   0x6   :  { %19 = vsyncpa [#allocation5], 0 }
   0x7   :  { %21 = vsyncpa [#allocation5 + $0x1], 0  ;;  %s1707_s13 = smov 0   ;;  %s1709_s14 = smov 0  }
   0x8   :  { %s1711_s15 = smov 0   ;;  %s1713_s16 = smov 0  }
   0x9 LB: > { %1968 = sst [smem:[#allocation9_spill]] %s1644_s15  ;;  %s1726_s17 = sadd.s32 4294967295, %s1648_s16   ;;  %s1648_s16 = sphi %s1713_s16, %s1980_s16   ;;  %s1644_s15 = sphi %s1711_s15, %s1982_s15   ;;  %s1640_s14 = sphi %s1709_s14, %s1984_s14   ;;  %s1636_s13 = sphi %s1707_s13, %s1983_s13  }
   0xa   : > { %s1729_s18 = sadd.s32 1, %s1648_s16   ;;  %s86_s20 = sadd.s32 1, %s1644_s15 }
   0xb   : > { %1969 = sst [smem:[#allocation10_spill]] %s1729_s18  ;;  %s83_s19 = ssub.s32 %s1648_s16, %s1729_s18 }
   0xc   : > { %p84_p0 = scmp.eq.s32.totalorder %s83_s19, 0  ;;  %p93_p1 = scmp.ne.s32.totalorder %s1644_s15, %s1640_s14 }
   0xd   : > { %p94_p2 = scmp.eq.s32.totalorder %s1648_s16, 0  ;;  %p99_p3 = scmp.ne.s32.totalorder %s1640_s14, %s1636_s13 }
   0xe   : > { %s1739_s21 = scalar_select %p84_p0, %s1644_s15, %s86_s20  }
   0xf   : > { %p95_p4 = por %p94_p2, %p93_p1  ;;  %p100_p5 = scmp.eq.s32.totalorder %s1726_s17, 0 }
  0x10   : > { %1970 = sst [smem:[#allocation11_spill]] %s1739_s21  ;;  %p1482_p6 = scmp.lt.s32.totalorder %s1648_s16, 2 }
  0x11   : > { %p1743_p7 = por %p100_p5, %p99_p3  ;;  %s1748_s23 = sand.u32 1, %s1644_s15  }
  0x12   : > { %s1958_s24 = sshll.u32 %s1748_s23, 6  ;;  %s1959_s25 = sshll.u32 %s1648_s16, 6 }
  0x13   : > { %p1752_p8 = pnand %p1482_p6, %p95_p4  ;;  %s375_s27 = sand.u32 1, %s1648_s16  }
  0x14   : > { %s1973_s4 = sld [smem:[#allocation13_spill]]  ;;  %s379_s12 = scalar_lea.vmem [#allocation4], %s1958_s24 }
  0x15   : > { %s387_s13 = sshll.u32 %s379_s12, 4  ;;  %s1764_s19 = scalar_lea.sflag [#allocation5], %s375_s27  ;;  %s388_s13 = int_to_ptr.vmem [resolvable:$true] %s387_s13 }
  0x16   : > { %p1524_p10 = pneg %p1752_p8 }
  0x1a   : > { %s384_s30 = scalar_lea.hbm %s1973_s4, %s1959_s25 }
  0x1b   : > { %s385_s11 = sshll.u32 %s384_s30, 4  ;;  %s1527_s30 = scalar_lea.hbm %s1973_s4, 128  ;;  %s386_s11 = int_to_ptr.hbm [resolvable:$true] %s385_s11 }
  0x1c   : > { %s1520_s20 = sshra.s32 %s386_s11, 4  ;;  %s1521_s20 = int_to_ptr.hbm [resolvable:$true] %s1520_s20 }
  0x1d   : > { %s1522_s21 = scalar_lea.hbm %s1521_s20, 64  ;;  %p1528_p13 = scmp.lt.s32.totalorder %s1521_s20, %s1973_s4 }
  0x1e   : > { %p1523_p9 = scmp.ne.s32.totalorder %s1521_s20, %s1522_s21  ;;  %p1529_p0 = scmp.lt.s32.totalorder %s1527_s30, %s1522_s21 }
  0x20   : > { %p1525_p11 = pnand %p1524_p10, %p1523_p9  ;;  %p1530_p1 = por %p1529_p0, %p1528_p13 }
  0x22   : > { %p1526_p12 = pneg %p1525_p11 }
  0x24   : > { %p1531_p2 = pnand %p1530_p1, %p1526_p12 }
  0x26   : > { %1534 = shalt.err (!%p1531_p2)
}
  0x27   : > { %s1963_s27 = smov 64   ;;  %s1651_s25 = smov 4  }
  0x28   : > { %1478 = dma.hbm_to_vmem [thread:$0]  (!%p1752_p8), %s386_s11, 1024, %s388_s13, %s1764_s19, %s1963_s27, %s1963_s27, %s1651_s25  }
  0x29   : > { %p1258_p3 = scmp.ge.s32.totalorder %s1648_s16, 1  ;;  %p429_p4 = scmp.lt.s32.totalorder %s1648_s16, 3 }
  0x2a   : > { %s1975_s24 = sshll.u32 %s1648_s16, 6  ;;  %s1976_s2 = sld [smem:[#allocation12_spill]] }
  0x2b   : > { %p1785_p5 = pnand %p1258_p3, %p429_p4  ;;  %s1977_s12 = sshll.u32 %s1748_s23, 6 }
  0x2c   : > { %s351_s4 = scalar_lea.vmem [#allocation2], %s1977_s12  ;;  %s348_s18 = scalar_lea.sflag [#allocation3], %s1748_s23 }
  0x2d   : > { %s359_s15 = sshll.u32 %s351_s4, 4  ;;  %s360_s15 = int_to_ptr.vmem [resolvable:$true] %s359_s15 }
  0x30   : > { %s356_s29 = scalar_lea.hbm %s1976_s2, %s1975_s24  ;;  %s1557_s20 = scalar_lea.hbm %s1976_s2, 128 }
  0x31   : > { %s357_s30 = sshll.u32 %s356_s29, 4  ;;  %s358_s30 = int_to_ptr.hbm [resolvable:$true] %s357_s30 }
  0x32   : > { %s1550_s10 = sshra.s32 %s358_s30, 4  ;;  %s1551_s10 = int_to_ptr.hbm [resolvable:$true] %s1550_s10 }
  0x33   : > { %s1552_s11 = scalar_lea.hbm %s1551_s10, 64  ;;  %p1558_p12 = scmp.lt.s32.totalorder %s1551_s10, %s1976_s2 }
  0x34   : > { %p1553_p6 = scmp.ne.s32.totalorder %s1551_s10, %s1552_s11  ;;  %p1559_p13 = scmp.lt.s32.totalorder %s1557_s20, %s1552_s11 }
  0x36   : > { %p1555_p9 = pnand %p1553_p6, %p1524_p10  ;;  %p1560_p0 = por %p1559_p13, %p1558_p12 }
  0x38   : > { %p1556_p11 = pneg %p1555_p9 }
  0x3a   : > { %p1561_p1 = pnand %p1560_p0, %p1556_p11 }
  0x3c   : > { %1564 = shalt.err (!%p1561_p1)
}
  0x3d   : > { %s1978_s4 = smov 64   ;;  %s1255_s29 = sshll.u32 %s1748_s23, 7 }
  0x3e   : > { %1475 = dma.hbm_to_vmem [thread:$0]  (!%p1752_p8), %s358_s30, 1024, %s360_s15, %s348_s18, %s1978_s4, %s1978_s4, %s1651_s25  }
  0x3f   : > { %s1424_s27 = sshll.u32 %s1648_s16, 7  ;;  %s407_s11 = scalar_lea.vmem [#allocation6], %s1255_s29 }
  0x40   : > { %s412_s24 = scalar_lea.hbm %s1953_s6, %s1424_s27  ;;  %s415_s20 = sshll.u32 %s407_s11, 4  ;;  %s416_s20 = int_to_ptr.vmem [resolvable:$true] %s415_s20 }
  0x41   : > { %s413_s10 = sshll.u32 %s412_s24, 4  ;;  %s1587_s16 = scalar_lea.hbm %s1953_s6, 256  ;;  %s414_s10 = int_to_ptr.hbm [resolvable:$true] %s413_s10 }
  0x42   : > { %s1580_s28 = sshra.s32 %s414_s10, 4  ;;  %s1581_s28 = int_to_ptr.hbm [resolvable:$true] %s1580_s28 }
  0x43   : > { %s1582_s2 = scalar_lea.hbm %s1581_s28, 128  ;;  %p1588_p6 = scmp.lt.s32.totalorder %s1581_s28, %s1953_s6 }
  0x44   : > { %p1583_p2 = scmp.ne.s32.totalorder %s1581_s28, %s1582_s2  ;;  %p1589_p9 = scmp.lt.s32.totalorder %s1587_s16, %s1582_s2 }
  0x46   : > { %p1585_p3 = pnand %p1583_p2, %p1524_p10  ;;  %p1590_p11 = por %p1589_p9, %p1588_p6 }
  0x48   : > { %p1586_p4 = pneg %p1585_p3 }
  0x4a   : > { %p1591_p12 = pnand %p1590_p11, %p1586_p4 }
  0x4c   : > { %1594 = shalt.err (!%p1591_p12)
}
  0x4d   : > { %1481 = dma.hbm_to_vmem [thread:$0]  (!%p1752_p8), %s414_s10, 2048, %s416_s20, %s1764_s19, %s1978_s4, %s1978_s4, %s1651_s25  }
  0x4e   : > { %433 = sbr.rel (%p1785_p5) target bundleno = 852 (0x354), region = 52  ;;  %s1834_s29 = sand.u32 (!%p1785_p5), 1, %s1640_s14  }
  0x4f   : > { %s1259_s2 = sshll.u32 (!%p1785_p5), %s1834_s29, 6  ;;  %s436_s27 = scalar_lea.sflag (!%p1785_p5), [#allocation3], %s1834_s29 }
  0x50   : > { %s439_s12 = scalar_lea.vmem (!%p1785_p5), [#allocation2], %s1259_s2 }
  0x53   : > { %1627 = dma.done.wait (%p1743_p7), %s436_s27, 1024  }
  0x54   : > { %1629 = vsyncadd (%p1743_p7), %s436_s27, 4294966272  ;;  %s445_s25 = sand.u32 1, %s1726_s17   ;;  %s1843_s19 = scalar_lea.vmem [#allocation4], %s1259_s2 }
  0x55   : > { %s446_s26 = scalar_lea.sflag [#allocation5], %s445_s25 }
  0x56   : > { %1631 = dma.done.wait (%p1743_p7), %s446_s26, 3072  }
  0x57   : > { %1633 = vsyncadd (%p1743_p7), %s446_s26, 4294964224  ;;  %v1438_v0 = vld [vmem:[%s439_s12 + $0x38] sm:$0xff]  ;;  %v1437_v1 = vld [vmem:[%s439_s12 + $0x30] sm:$0xff]  ;;  %p536_p8 = scmp.lt.s32.totalorder %s1726_s17, 1  ;;  %vm676_vm0 = vcmask 130048   ;;  %s1261_s2 = sshll.u32 %s1834_s29, 7 }
  0x58   : > { %643 = vmatpush.bf16.msra.mxu0 %v1438_v0  ;;  %v1436_v2 = vld [vmem:[%s439_s12 + $0x28] sm:$0xff]  ;;  %v1435_v3 = vld [vmem:[%s439_s12 + $0x20] sm:$0xff]  ;;  %v1434_v4 = vld [vmem:[%s439_s12 + $0x18] sm:$0xff]  ;;  %s1887_s27 = scalar_lea.vmem [#allocation6], %s1261_s2  ;;  %s1979_s16 = sld [smem:[#allocation14_spill]] }
  0x59   : > { %v1433_v5 = vld [vmem:[%s439_s12 + $0x10] sm:$0xff]  ;;  %s1986_s17 = smov (!%p536_p8, %s1726_s17), 1  ;;  %v1432_v6 = vld [vmem:[%s439_s12 + $0x8] sm:$0xff]  ;;  %v1431_v7 = vld [vmem:[%s439_s12] sm:$0xff] }
  0x5a   : > { %s1426_s22 = sshll.u32 %s1986_s17, 3  ;;  %s548_s11 = scalar_lea.vmem %s1950_s3, %s1986_s17  ;;  %v1448_v9 = vld [vmem:[%s1843_s19 + $0x38] sm:$0xff]  ;;  %v1447_v11 = vld [vmem:[%s1843_s19 + $0x30] sm:$0xff]  ;;  %v1446_v12 = vld [vmem:[%s1843_s19 + $0x28] sm:$0xff] }
  0x5b   : > { %s545_s13 = scalar_lea.vmem %s1948_s1, %s1426_s22  ;;  %772 = vmatpush.bf16.msra.mxu2 %v1448_v9  ;;  %s1864_s20 = sshll.u32 %s1986_s17, 4  ;;  %v1445_v14 = vld [vmem:[%s1843_s19 + $0x20] sm:$0xff]  ;;  %v1444_v18 = vld [vmem:[%s1843_s19 + $0x18] sm:$0xff]  ;;  %v1443_v19 = vld [vmem:[%s1843_s19 + $0x10] sm:$0xff] }
  0x5c   : > { %644 = vmatpush.bf16.msra.mxu0 %v1437_v1  ;;  %v1430_v8 = vld [vmem:[%s545_s13] sm:$0xff]  ;;  %s1871_s18 = scalar_lea.vmem %s1947_s0, %s1864_s20  ;;  %v1442_v20 = vld [vmem:[%s1843_s19 + $0x8] sm:$0xff]  ;;  %s551_s30 = scalar_lea.vmem %s1952_s5, %s1986_s17  ;;  %v1457_v38 = vld [vmem:[%s1887_s27 + $0x38] sm:$0xff] }
  0x5d   : > { %v1439_v16 = vld [vmem:[%s1871_s18] sm:$0xff]  ;;  %v1440_v17 = vld [vmem:[%s1871_s18 + $0x8] sm:$0xff]  ;;  %v1456_v39 = vld [vmem:[%s1887_s27 + $0x30] sm:$0xff]  ;;  %s554_s25 = scalar_lea.vmem %s1954_s7, %s1986_s17  ;;  %s559_s4 = scalar_lea.vmem %s1955_s8, %s1864_s20 }
  0x5e   : > { %v1441_v21 = vld [vmem:[%s1843_s19] sm:$0xff]  ;;  %v1455_v42 = vld [vmem:[%s1887_s27 + $0x28] sm:$0xff]  ;;  %v1453_v50 = vld [vmem:[%s1887_s27 + $0x18] sm:$0xff]  ;;  %s564_s10 = scalar_lea.vmem %s1956_s9, %s1864_s20  ;;  %s569_s23 = scalar_lea.vmem %s1979_s16, %s1864_s20 }
  0x5f   : > { %773 = vmatpush.bf16.msra.mxu2 %v1447_v11  ;;  %v1517_v23 = vld [vmem:[%s548_s11] ss:$0 sm:$0xff]  ;;  %v1465_v56 = vld [vmem:[%s1887_s27 + $0x78] sm:$0xff]  ;;  %v1464_v58 = vld [vmem:[%s1887_s27 + $0x70] sm:$0xff] }
  0x60   : > { %645 = vmatpush.bf16.msra.mxu0 %v1436_v2  ;;  %v1454_v46 = vld [vmem:[%s1887_s27 + $0x20] sm:$0xff]  ;;  %v1452_v59 = vld [vmem:[%s1887_s27 + $0x10] sm:$0xff]  ;;  %v1463_v60 = vld [vmem:[%s1887_s27 + $0x68] sm:$0xff] }
  0x61   : > { %v1449_v48 = vld [vmem:[%s1871_s18] sm:$0xff]  ;;  %v1451_v61 = vld [vmem:[%s1887_s27 + $0x8] sm:$0xff]  ;;  %v1461_v0 = vld [vmem:[%s1887_s27 + $0x58] sm:$0xff] }
  0x62   : > { %v1462_v62 = vld [vmem:[%s1887_s27 + $0x60] sm:$0xff]  ;;  %v1460_v1 = vld [vmem:[%s1887_s27 + $0x50] sm:$0xff]  ;;  %v1459_v2 = vld [vmem:[%s1887_s27 + $0x48] sm:$0xff] }
  0x63   : > { %774 = vmatpush.bf16.msra.mxu2 %v1446_v12  ;;  %v1450_v63 = vld [vmem:[%s1887_s27] sm:$0xff] }
  0x64   : > { %646 = vmatpush.bf16.msra.mxu0 %v1435_v3  ;;  %v1518_v3 = vld [vmem:[%s551_s30] ss:$0 sm:$0xff] }
  0x67   : > { %775 = vmatpush.bf16.msra.mxu2 %v1445_v14 }
  0x68   : > { %647 = vmatpush.bf16.msra.mxu0 %v1434_v4  ;;  %v1458_v4 = vld [vmem:[%s1887_s27 + $0x40] sm:$0xff] }
  0x6b   : > { %776 = vmatpush.bf16.msra.mxu2 %v1444_v18 }
  0x6c   : > { %648 = vmatpush.bf16.msra.mxu0 %v1433_v5 }
  0x6f   : > { %777 = vmatpush.bf16.msra.mxu2 %v1443_v19 }
  0x70   : > { %649 = vmatpush.bf16.msra.mxu0 %v1432_v6 }
  0x73   : > { %778 = vmatpush.bf16.msra.mxu2 %v1442_v20 }
  0x74   : > { %650 = vmatpush.bf16.msra.mxu0 %v1431_v7 }
  0x77   : > { %651 = vmatmul.bf16.vlgmr.msra.gmra.mxu0 %v1430_v8  ;;  %779 = vmatpush.bf16.msra.mxu2 %v1441_v21 }
  0xf4   : > { %v652_v10 = vpop.f32.mrf.mxu0 }
  0xfc   : > { %v654_v13 = vpop.f32.mrf.mxu0 }
  0xfd   : > { %v657_v15 = vpack.c.bf16 %v654_v13, %v652_v10 }
  0xff   : > { %690 = vmatpush.bf16.msra.mxu1 %v657_v15 }
 0x102   : > { %1316 = vmatmul.msk.bf16.vlgmr.msra.gmra.mxu1 %vm676_vm0, %v1439_v16  ;;  %v1519_v16 = vld [vmem:[%s554_s25] ss:$0 sm:$0xff] }
 0x103   : > { %987 = vmatpush.bf16.msrb.mxu1 %v1457_v38 }
 0x107   : > { %988 = vmatpush.bf16.msrb.mxu1 %v1456_v39 }
 0x10b   : > { %989 = vmatpush.bf16.msrb.mxu1 %v1455_v42 }
 0x10f   : > { %990 = vmatpush.bf16.msrb.mxu1 %v1454_v46 }
 0x112   : > { %1317 = vmatmul.msk.bf16.gmra.mxu1 %vm676_vm0, %v1440_v17 }
 0x113   : > { %991 = vmatpush.bf16.msrb.mxu1 %v1453_v50 }
 0x117   : > { %992 = vmatpush.bf16.msrb.mxu1 %v1452_v59 }
 0x11b   : > { %993 = vmatpush.bf16.msrb.mxu1 %v1451_v61 }
 0x11f   : > { %994 = vmatpush.bf16.msrb.mxu1 %v1450_v63 }
 0x17f   : > { %v692_v22 = vpop.f32.mrf.mxu1 }
 0x180   : > { %v693_v24 = vadd.f32 %v1517_v23, %v692_v22 }
 0x182   : > { %v702_v27 = vmax.f32 %v693_v24, 0.0 }
 0x187   : > { %v694_v25 = vpop.f32.mrf.mxu1 }
 0x188   : > { %v695_v26 = vadd.f32 %v1517_v23, %v694_v25 }
 0x18a   : > { %v703_v28 = vmax.f32 %v695_v26, 0.0 }
 0x18c   : > { %v706_v29 = vpack.c.bf16 %v703_v28, %v702_v27 }
 0x18e   : > { %780 = vmatmul.bf16.vlgmr.msra.gmra.mxu2 %v706_v29 }
 0x18f   : > { %v697_v30 = vpop.f32.mrf.mxu1 }
 0x190   : > { %v698_v31 = vadd.f32 %v1517_v23, %v697_v30 }
 0x192   : > { %v704_v34 = vmax.f32 %v698_v31, 0.0 }
 0x197   : > { %v699_v32 = vpop.f32.mrf.mxu1 }
 0x198   : > { %v700_v33 = vadd.f32 %v1517_v23, %v699_v32 }
 0x19a   : > { %v705_v35 = vmax.f32 %v700_v33, 0.0 }
 0x19c   : > { %v707_v36 = vpack.c.bf16 %v705_v35, %v704_v34 }
 0x19e   : > { %785 = vmatmul.bf16.gmra.mxu2 %v707_v36 }
 0x211   : > { %v781_v37 = vpop.f32.mrf.mxu2 }
 0x212   : > { %v791_v40 = vpack.c.bf16 %v781_v37, %v781_v37 }
 0x214   : > { %v808_v44 = vunpack.c.l.b16 %v791_v40 }
 0x219   : > { %v783_v41 = vpop.f32.mrf.mxu2 }
 0x21a   : > { %v792_v43 = vpack.c.bf16 %v783_v41, %v783_v41 }
 0x21c   : > { %v809_v45 = vunpack.c.l.b16 %v792_v43 }
 0x21e   : > { %v810_v47 = vpack.c.b16 %v809_v45, %v808_v44 }
 0x220   : > { %822 = vmatpush.bf16.msrb.mxu0 %v810_v47 }
 0x221   : > { %v786_v49 = vpop.f32.mrf.mxu2 }
 0x222   : > { %v793_v51 = vpack.c.bf16 %v786_v49, %v786_v49 }
 0x223   : > { %1354 = vmatmul.msk.bf16.vlgmr.msrb.gmra.mxu0 %vm676_vm0, %v1449_v48 }
 0x224   : > { %v831_v54 = vunpack.c.l.b16 %v793_v51 }
 0x229   : > { %v788_v52 = vpop.f32.mrf.mxu2 }
 0x22a   : > { %v794_v53 = vpack.c.bf16 %v788_v52, %v788_v52 }
 0x22c   : > { %v832_v55 = vunpack.c.l.b16 %v794_v53 }
 0x22e   : > { %v833_v57 = vpack.c.b16 %v832_v55, %v831_v54 }
 0x230   : > { %842 = vmatpush.bf16.msra.mxu3 %v833_v57 }
 0x233   : > { %1355 = vmatmul.msk.bf16.vlgmr.msra.gmra.mxu3 %vm676_vm0, %v1440_v17 }
 0x234   : > { %1001 = vmatpush.bf16.msrb.mxu3 %v1465_v56 }
 0x238   : > { %1002 = vmatpush.bf16.msrb.mxu3 %v1464_v58 }
 0x23c   : > { %1003 = vmatpush.bf16.msrb.mxu3 %v1463_v60 }
 0x240   : > { %1004 = vmatpush.bf16.msrb.mxu3 %v1462_v62 }
 0x244   : > { %1005 = vmatpush.bf16.msrb.mxu3 %v1461_v0 }
 0x248   : > { %1006 = vmatpush.bf16.msrb.mxu3 %v1460_v1 }
 0x24c   : > { %1007 = vmatpush.bf16.msrb.mxu3 %v1459_v2 }
 0x250   : > { %1008 = vmatpush.bf16.msrb.mxu3 %v1458_v4 }
 0x2a0   : > { %v824_v5 = vpop.f32.mrf.mxu0 }
 0x2a1   : > { %v825_v6 = vadd.f32 %v1518_v3, %v824_v5 }
 0x2a3   : > { %849 = vst [vmem:[%s559_s4] sm:$0xff] %v825_v6 }
 0x2a8   : > { %v826_v7 = vpop.f32.mrf.mxu0 }
 0x2a9   : > { %v827_v8 = vadd.f32 %v1518_v3, %v826_v7 }
 0x2ab   : > { %850 = vst [vmem:[%s559_s4 + $0x8] sm:$0xff] %v827_v8  ;;  %v853_v9 = vpack.c.bf16 %v827_v8, %v825_v6 }
 0x2ad   : > { %995 = vmatmul.bf16.vlgmr.msrb.gmra.mxu1 %v853_v9 }
 0x2b6   : > { %v844_v10 = vpop.f32.mrf.mxu3 }
 0x2b7   : > { %v845_v11 = vadd.f32 %v1518_v3, %v844_v10 }
 0x2b9   : > { %851 = vst [vmem:[%s564_s10] sm:$0xff] %v845_v11 }
 0x2be   : > { %v846_v12 = vpop.f32.mrf.mxu3 }
 0x2bf   : > { %v847_v13 = vadd.f32 %v1518_v3, %v846_v12 }
 0x2c1   : > { %852 = vst [vmem:[%s564_s10 + $0x8] sm:$0xff] %v847_v13  ;;  %v854_v14 = vpack.c.bf16 %v847_v13, %v845_v11 }
 0x2c3   : > { %1009 = vmatmul.bf16.vlgmr.msrb.gmra.mxu3 %v854_v14 }
 0x32a   : > { %v996_v15 = vpop.f32.mrf.mxu1 }
 0x32b   : > { %v997_v17 = vadd.f32 %v1519_v16, %v996_v15 }
 0x332   : > { %v998_v21 = vpop.f32.mrf.mxu1 }
 0x333   : > { %v999_v22 = vadd.f32 %v1519_v16, %v998_v21 }
 0x346   : > { %v1010_v18 = vpop.f32.mrf.mxu3 }
 0x347   : > { %v1011_v19 = vadd.f32 %v1010_v18, %v997_v17 }
 0x349   : > { %v1015_v20 = vmax.f32 %v1011_v19, 0.0 }
 0x34b   : > { %1017 = vst [vmem:[%s569_s23] sm:$0xff] %v1015_v20 }
 0x34e   : > { %v1012_v23 = vpop.f32.mrf.mxu3 }
 0x34f   : > { %v1013_v24 = vadd.f32 %v1012_v23, %v999_v22 }
 0x351   : > { %v1016_v25 = vmax.f32 %v1013_v24, 0.0 }
 0x353   : > { %1018 = vst [vmem:[%s569_s23 + $0x8] sm:$0xff] %v1016_v25 }
 0x354 PF: > { %s1980_s16 = sld [smem:[#allocation10_spill]]  ;;  %s1983_s13 = smov %s1640_s14 }
 0x355   : > { %s1981_s17 = sld [smem:[#allocation9_spill]] }
 0x356   : > { %s1982_s15 = sld [smem:[#allocation11_spill]] }
 0x35a   : > { %p24_p7 = scmp.ge.s32.totalorder %s1980_s16, 4  }
 0x35b   : > { %s1984_s14 = smov %s1981_s17 }
 0x35c   :  { %26 = sbr.rel (!%p24_p7) target bundleno = 9 (0x9), region = 155 }
 0x361   :  { %1072 = vsyncpa [#allocation3], 1 }
 0x362   :  { %1074 = vsyncpa [#allocation3 + $0x1], 1 }
 0x363   :  { %1075 = vsyncpa [#allocation5], 1 }
 0x364   :  { %1077 = vsyncpa [#allocation5 + $0x1], 1 }

</bundles_post_ra>
